<compile_context>
chip_gen: v6e
topology: v6e:2x2x1
jax: 0.10.0
libtpu: 0.0.40
codegen_flags: <defaults>
</compile_context>

<pallas_src>
import functools

import jax
import jax.numpy as jnp
import numpy as np
from jax import lax
from jax.experimental import pallas as pl
from jax.experimental.pallas import tpu as pltpu

DECONV_K = 4  # fixed by the module (stride=2, padding=1)


def _round_up(v, m):
    return (v + m - 1) // m * m


def _deconv_xshift_kernel(x_ref, w_ref, b_ref, o_ref, *, wp, bsz, lpp, loutp):
    """Small-Cin scheme: shift the bf16 input and fold the shifts into K."""
    # x_ref: (Cinp, bsz*lpp + tail) bf16  flattened padded images, lanes = row*wp + col
    # w_ref: (4*OCp, 9*Cinp)        bf16  phase-major rows, shift-major K blocks
    # b_ref: (4*OCp, 1)             f32   bias replicated per output phase
    # o_ref: (bsz, 4*OCp, loutp)    f32   phase-major output, lanes = q*wp + r
    x = x_ref[...]
    n_lanes = bsz * lpp
    blocks = []
    for a in range(3):              # input row shift
        for c in range(3):          # input col shift
            sh = a * wp + c
            blocks.append(x[:, sh:sh + n_lanes])          # static lane shift, bf16 rows
    x9 = jnp.concatenate(blocks, axis=0)                  # (9*Cinp, bsz*lpp)
    # One MXU matmul per grid step: (4*OCp, 9*Cinp) @ (9*Cinp, bsz*lpp), f32 acc.
    y = jnp.dot(w_ref[...], x9, preferred_element_type=jnp.float32)
    bias = b_ref[...]
    for b in range(bsz):            # static loop; slices are 128-lane aligned
        o_ref[b, :, :] = (y[:, b * lpp:b * lpp + loutp] + bias).astype(o_ref.dtype)


def _deconv_yshift_kernel(x_ref, w_ref, b_ref, o_ref, *, wp, ocp, bsz, lpp, loutp):
    """Large-Cin scheme: one fused matmul, shift the f32 result per (phase, tap)."""
    # x_ref: (Cin, bsz*lpp + tail)  bf16
    # w_ref: (16*OCp, Cin)          bf16  rows ordered ((tap j,i), (phase p,s), oc)
    # b_ref: (OCp, 1)               f32
    # o_ref: (bsz, 4*OCp, loutp)    f32
    y = jnp.dot(w_ref[...], x_ref[...], preferred_element_type=jnp.float32)
    bias = b_ref[...]
    for b in range(bsz):
        base = b * lpp
        for p in range(2):              # output row phase: oh = 2q + p
            for s in range(2):          # output col phase: ow = 2r + s
                pidx = 2 * p + s
                acc = None
                for j in range(2):      # input row neighbour
                    for i in range(2):  # input col neighbour
                        off = base + (p + 1 - j) * wp + (s + 1 - i)
                        row = ((j * 2 + i) * 4 + pidx) * ocp
                        term = y[row:row + ocp, off:off + loutp]
                        # bias folded into the first tap term (no extra pass)
                        acc = (term + bias) if acc is None else (acc + term)
                # direct per-phase store (sublane-aligned: ocp % 8 == 0)
                o_ref[b, pidx * ocp:(pidx + 1) * ocp, :] = acc.astype(o_ref.dtype)


def keypoint_upsample(x_nchw, weight, bias, *, block_rois=None):
    """KeypointUpSample forward.

    x_nchw: (N, Cin, H, W) f32; weight: (Cin, OC, 4, 4) PyTorch
    ConvTranspose2d layout; bias: (OC,).  Returns (N, OC, 2H, 2W) f32.
    """
    n, cin, h, w = x_nchw.shape
    oc = weight.shape[1]
    hp, wp = h + 2, w + 2
    ocp = _round_up(oc, 8)

    # Lane geometry (all multiples of 128 -> unmasked stores, aligned slices).
    lout = h * wp                        # valid output lanes per sample
    loutp = _round_up(lout, 128)         # stored output lanes per sample
    lpp = _round_up(hp * wp, 128)        # input lane stride per sample
    xtail = _round_up(2 * wp + 2, 128)   # slack so the max static lane shift is in-bounds

    # Samples per grid step: amortizes per-step overhead; heuristic keeps the
    # grid at >=2 steps so both v7x TensorCores get work.
    if block_rois is None:
        block_rois = max(1, min(8, n // 2))
    bsz = max(1, min(block_rois, n))
    grid_n = pl.cdiv(n, bsz)
    n_pad = grid_n * bsz
    lx = bsz * lpp + xtail               # input block lane extent

    # Scheme choice: shift the bf16 input (9*Cin rows) when that moves fewer
    # bytes than shifting the f32 matmul result (16*OCp rows).
    use_x_shift = 9 * cin * 2 < 16 * ocp * 4
    cinp = _round_up(cin, 8) if use_x_shift else cin

    # ---- host prologue: pad -> cast -> pack `bsz` samples along lanes ------
    x_pad = jnp.pad(x_nchw, ((0, n_pad - n), (0, cinp - cin), (1, 1), (1, 1)))
    x_flat = x_pad.reshape(n_pad, cinp, hp * wp)
    x_flat = jnp.pad(x_flat, ((0, 0), (0, 0), (0, lpp - hp * wp)))
    x_flat = (x_flat.astype(jnp.bfloat16)
              .reshape(grid_n, bsz, cinp, lpp)
              .transpose(0, 2, 1, 3)
              .reshape(grid_n, cinp, bsz * lpp))
    x_flat = jnp.pad(x_flat, ((0, 0), (0, 0), (0, xtail)))   # (grid_n, cinp, lx)

    w_f32 = weight.astype(jnp.float32)
    b_f32 = bias.astype(jnp.float32)
    if use_x_shift:
        # W9[(2p+s)*OCp + oc, (3a+c)*Cinp + ci] = weight[ci, oc, 2j+1-p, 2i+1-s]
        # with j = p+1-a, i = s+1-c when both lie in {0,1}; zero otherwise.
        zero_blk = jnp.zeros((ocp, cinp), jnp.float32)
        k_blocks = []
        for a in range(3):
            for c in range(3):
                phase_rows = []
                for p in range(2):
                    for s in range(2):
                        j, i = p + 1 - a, s + 1 - c
                        if 0 <= j <= 1 and 0 <= i <= 1:
                            blk = w_f32[:, :, 2 * j + 1 - p, 2 * i + 1 - s].T
                            blk = jnp.pad(blk, ((0, ocp - oc), (0, cinp - cin)))
                        else:
                            blk = zero_blk
                        phase_rows.append(blk)
                k_blocks.append(jnp.concatenate(phase_rows, axis=0))
        w_fused = jnp.concatenate(k_blocks, axis=1).astype(jnp.bfloat16)  # (4*OCp, 9*Cinp)
        b_fused = jnp.tile(jnp.pad(b_f32, (0, ocp - oc)), (4,)).reshape(4 * ocp, 1)
        kernel = functools.partial(_deconv_xshift_kernel,
                                   wp=wp, bsz=bsz, lpp=lpp, loutp=loutp)
        flops = 2 * grid_n * (4 * ocp) * (9 * cinp) * (bsz * lpp)
    else:
        # Fused taps: row ((j*2+i)*4 + (2p+s))*OCp + oc holds weight[:, oc, 2j+1-p, 2i+1-s].
        tap_blocks = []
        for j in range(2):
            for i in range(2):
                for p in range(2):
                    for s in range(2):
                        blk = w_f32[:, :, 2 * j + 1 - p, 2 * i + 1 - s].T
                        tap_blocks.append(jnp.pad(blk, ((0, ocp - oc), (0, 0))))
        w_fused = jnp.concatenate(tap_blocks, axis=0).astype(jnp.bfloat16)  # (16*OCp, Cin)
        b_fused = jnp.pad(b_f32, (0, ocp - oc)).reshape(ocp, 1)
        kernel = functools.partial(_deconv_yshift_kernel,
                                   wp=wp, ocp=ocp, bsz=bsz, lpp=lpp, loutp=loutp)
        flops = 2 * grid_n * (16 * ocp) * cin * (bsz * lpp)

    out = pl.pallas_call(
        kernel,
        out_shape=jax.ShapeDtypeStruct((n_pad, 4 * ocp, loutp), jnp.float32),
        grid=(grid_n,),
        in_specs=[
            # NOTE: if profiling shows exposed input DMA at grid start, add
            # pipeline_mode=pl.Buffered(3) to this spec.
            pl.BlockSpec((None, cinp, lx), lambda g: (g, 0, 0)),   # per-step input
            pl.BlockSpec(w_fused.shape, lambda g: (0, 0)),         # resident weights
            pl.BlockSpec(b_fused.shape, lambda g: (0, 0)),         # resident bias
        ],
        out_specs=pl.BlockSpec((bsz, 4 * ocp, loutp), lambda g: (g, 0, 0)),
        compiler_params=pltpu.CompilerParams(
            dimension_semantics=("parallel",),
            # Per-step VMEM (2x input + 2x output blocks + weights + the f32
            # intermediate) stays < ~10 MiB for block_rois<=8 even at Cin=512,
            # so 32 MiB is safe on v5e/v6e (128 MiB) and v7x (64 MiB).
            vmem_limit_bytes=32 * 1024 * 1024,
        ),
        cost_estimate=pl.CostEstimate(
            flops=flops,
            transcendentals=0,
            bytes_accessed=(x_flat.size * 2 + w_fused.size * 2 + b_fused.size * 4
                            + n_pad * 4 * ocp * loutp * 4),
        ),
    )(x_flat, w_fused, b_fused)

    # Single crop + de-interleave pass:
    #   out[nb, (2p+s)*OCp + oc, q*wp + r]  ->  y[nb, oc, 2q+p, 2r+s]
    # NOTE: the [:lout] and [..., :w] crops are load-bearing — lanes beyond
    # them hold row-wrap / padding junk by construction.
    y = out[:n, :, :lout].reshape(n, 2, 2, ocp, h, wp)[:, :, :, :oc, :, :w]
    y = jnp.transpose(y, (0, 3, 4, 1, 5, 2)).reshape(n, oc, 2 * h, 2 * w)
    # F.interpolate(scale_factor=1.0, mode='bilinear', align_corners=False,
    # recompute_scale_factor=False) at scale 1 is an exact identity: no-op.
    # TODO(synk): emit bf16 / keep the phase-major layout if the downstream
    # consumer tolerates it (saves one full HBM pass of the output).
    return y


def _reference_deconv(x, weight, bias):
    """Pure-JAX f32 ConvTranspose2d(k=4, s=2, p=1) reference."""
    w_flip = jnp.flip(weight, axis=(2, 3))
    w_oihw = jnp.transpose(w_flip, (1, 0, 2, 3))
    out = lax.conv_general_dilated(
        x, w_oihw, window_strides=(1, 1), padding=[(2, 2), (2, 2)],
        lhs_dilation=(2, 2), dimension_numbers=("NCHW", "OIHW", "NCHW"))
    return out + bias[None, :, None, None]


if __name__ == "__main__":
    root = jax.random.PRNGKey(0)

    # (n, cin, h, w, oc, block_rois, random_bias)
    configs = [
        (2, 4, 16, 16, 8, None, False),  # primary (module-faithful): x-shift path
        (3, 32, 8, 8, 8, 2, True),       # y-shift path, bsz=2, ragged batch padding
        (5, 4, 8, 8, 8, 4, True),        # x-shift path with bsz=4 lane packing
    ]
    for n, cin, h, w, oc, br, random_bias in configs:
        root, sub = jax.random.split(root)
        kx, kw, kb = jax.random.split(sub, 3)
        x = jax.random.normal(kx, (n, cin, h, w), jnp.float32)
        # kaiming_normal_(mode='fan_out', nonlinearity='relu') on a
        # ConvTranspose2d weight (Cin, OC, kH, kW): fan_out = Cin * kH * kW.
        fan_out = cin * DECONV_K * DECONV_K
        weight = jax.random.normal(kw, (cin, oc, DECONV_K, DECONV_K),
                                   jnp.float32) * np.sqrt(2.0 / fan_out)
        if random_bias:
            bias = jax.random.normal(kb, (oc,), jnp.float32)   # exercise the bias path
        else:
            bias = jnp.zeros((oc,), jnp.float32)               # nn.init.constant_(bias, 0)

        y = jax.block_until_ready(keypoint_upsample(x, weight, bias, block_rois=br))
        assert y.shape == (n, oc, 2 * h, 2 * w), y.shape
        ref = _reference_deconv(x, weight, bias)
        # Kernel uses bf16 inputs / f32 accumulation -> modest tolerance vs f32 ref.
        np.testing.assert_allclose(np.asarray(y), np.asarray(ref),
                                   atol=5e-2, rtol=5e-2)

    print("KERNEL_OK")
</pallas_src>

<mosaic_0001>
module attributes {stable_mosaic.version = 11 : i64} {
  func.func @_deconv_xshift_kernel(%arg0: i32, %arg1: memref<1x8x512xbf16, #tpu.memory_space<vmem>>, %arg2: memref<32x72xbf16, #tpu.memory_space<vmem>>, %arg3: memref<32x1xf32, #tpu.memory_space<vmem>>, %arg4: memref<1x32x384xf32, #tpu.memory_space<vmem>>) attributes {dimension_semantics = [#tpu.dimension_semantics<parallel>], iteration_bounds = array<i64: 2>, scalar_prefetch = 0 : i64, scratch_operands = 0 : i64, tpu.core_type = #tpu.core_type<tc>, window_params = [{transform_indices = @transform_0, window_bounds = array<i64: 1, 8, 512>}, {pipeline_mode = #tpu.pipeline_mode<synchronous>, transform_indices = @transform_1, window_bounds = array<i64: 32, 72>}, {pipeline_mode = #tpu.pipeline_mode<synchronous>, transform_indices = @transform_2, window_bounds = array<i64: 32, 1>}, {transform_indices = @transform_3, window_bounds = array<i64: 1, 32, 384>}]} {
    %c0 = arith.constant 0 : index
    %c0_0 = arith.constant 0 : index
    %c0_1 = arith.constant 0 : index
    %0 = vector.load %arg1[%c0, %c0_0, %c0_1] : memref<1x8x512xbf16, #tpu.memory_space<vmem>>, vector<1x8x512xbf16>
    %1 = vector.shape_cast %0 : vector<1x8x512xbf16> to vector<8x512xbf16>
    %2 = vector.extract_strided_slice %1 {offsets = [0, 0], sizes = [8, 384], strides = [1, 1]} : vector<8x512xbf16> to vector<8x384xbf16>
    %3 = vector.extract_strided_slice %1 {offsets = [0, 1], sizes = [8, 384], strides = [1, 1]} : vector<8x512xbf16> to vector<8x384xbf16>
    %4 = vector.extract_strided_slice %1 {offsets = [0, 2], sizes = [8, 384], strides = [1, 1]} : vector<8x512xbf16> to vector<8x384xbf16>
    %5 = vector.extract_strided_slice %1 {offsets = [0, 18], sizes = [8, 384], strides = [1, 1]} : vector<8x512xbf16> to vector<8x384xbf16>
    %6 = vector.extract_strided_slice %1 {offsets = [0, 19], sizes = [8, 384], strides = [1, 1]} : vector<8x512xbf16> to vector<8x384xbf16>
    %7 = vector.extract_strided_slice %1 {offsets = [0, 20], sizes = [8, 384], strides = [1, 1]} : vector<8x512xbf16> to vector<8x384xbf16>
    %8 = vector.extract_strided_slice %1 {offsets = [0, 36], sizes = [8, 384], strides = [1, 1]} : vector<8x512xbf16> to vector<8x384xbf16>
    %9 = vector.extract_strided_slice %1 {offsets = [0, 37], sizes = [8, 384], strides = [1, 1]} : vector<8x512xbf16> to vector<8x384xbf16>
    %10 = vector.extract_strided_slice %1 {offsets = [0, 38], sizes = [8, 384], strides = [1, 1]} : vector<8x512xbf16> to vector<8x384xbf16>
    %11 = tpu.concatenate %2, %3, %4, %5, %6, %7, %8, %9, %10 in 0 : vector<8x384xbf16>, vector<8x384xbf16>, vector<8x384xbf16>, vector<8x384xbf16>, vector<8x384xbf16>, vector<8x384xbf16>, vector<8x384xbf16>, vector<8x384xbf16>, vector<8x384xbf16> -> vector<72x384xbf16>
    %c0_2 = arith.constant 0 : index
    %c0_3 = arith.constant 0 : index
    %12 = vector.load %arg2[%c0_2, %c0_3] : memref<32x72xbf16, #tpu.memory_space<vmem>>, vector<32x72xbf16>
    %cst = arith.constant dense<0.000000e+00> : vector<32x384xf32>
    %13 = tpu.matmul %12, %11, %cst {dimension_numbers = #tpu.dot_dimension_numbers<[1], [0], [0], [1], [0, 0, 1, 1], [], []>} : vector<32x72xbf16>, vector<72x384xbf16>, vector<32x384xf32> -> vector<32x384xf32>
    %c0_4 = arith.constant 0 : index
    %c0_5 = arith.constant 0 : index
    %14 = vector.load %arg3[%c0_4, %c0_5] : memref<32x1xf32, #tpu.memory_space<vmem>>, vector<32x1xf32>
    %15 = vector.broadcast %14 : vector<32x1xf32> to vector<32x384xf32>
    %16 = arith.addf %13, %15 : vector<32x384xf32>
    %c0_6 = arith.constant 0 : index
    %c0_7 = arith.constant 0 : index
    %c0_8 = arith.constant 0 : index
    %17 = vector.load %arg4[%c0_6, %c0_7, %c0_8] : memref<1x32x384xf32, #tpu.memory_space<vmem>>, vector<1x32x384xf32>
    %18 = vector.shape_cast %17 : vector<1x32x384xf32> to vector<32x384xf32>
    %19 = vector.shape_cast %16 : vector<32x384xf32> to vector<1x32x384xf32>
    tpu.vector_store %arg4[%c0_6, %c0_7, %c0_8], %19 {strides = array<i32>} : memref<1x32x384xf32, #tpu.memory_space<vmem>>, vector<1x32x384xf32>,
    return
  }
  func.func @transform_0(%arg0: i32) -> (i32, i32, i32) {
    %c0_i32 = arith.constant 0 : i32
    %c0_i32_0 = arith.constant 0 : i32
    %c0_i32_1 = arith.constant 0 : i32
    return %arg0, %c0_i32, %c0_i32_0 : i32, i32, i32
  }
  func.func @transform_1(%arg0: i32) -> (i32, i32) {
    %c0_i32 = arith.constant 0 : i32
    %c0_i32_0 = arith.constant 0 : i32
    %c0_i32_1 = arith.constant 0 : i32
    return %c0_i32, %c0_i32_0 : i32, i32
  }
  func.func @transform_2(%arg0: i32) -> (i32, i32) {
    %c0_i32 = arith.constant 0 : i32
    %c0_i32_0 = arith.constant 0 : i32
    %c0_i32_1 = arith.constant 0 : i32
    return %c0_i32, %c0_i32_0 : i32, i32
  }
  func.func @transform_3(%arg0: i32) -> (i32, i32, i32) {
    %c0_i32 = arith.constant 0 : i32
    %c0_i32_0 = arith.constant 0 : i32
    %c0_i32_1 = arith.constant 0 : i32
    return %arg0, %c0_i32, %c0_i32_0 : i32, i32, i32
  }
}

</mosaic_0001>

<bundles_post_ra>
// kernel: tpu_custom_call.1
= control target key start
LH: loop header
LB: loop body
LE: loop exit
PB: predicated region body
PF: predicated region fallthrough
CT: control target
= control target key end

     0   :  { %8 = vsyncpa [#allocation3], 0  ;;  %s1083_s0 = inlined_call_operand.vmem [shape: bf16[2,8,512], index: 0, kind: input, shape index: {}]   ;;  %s1084_s1 = inlined_call_operand.hbm [shape: bf16[32,72], index: 1, kind: input, shape index: {}]   ;;  %s1085_s2 = inlined_call_operand.vmem [shape: f32[32,1], index: 2, kind: input, shape index: {}]   ;;  %s1086_s3 = inlined_call_operand.hbm [shape: f32[2,32,384], index: 3, kind: output, shape index: {}]  }
   0x1   :  { %9 = vsyncpa [#allocation4], 0 }
   0x2   :  { %11 = vsyncpa [#allocation4 + $0x1], 0  ;;  %s843_s12 = smov 0   ;;  %s845_s13 = smov 0  }
   0x3   :  { %s847_s14 = smov 0   ;;  %s849_s15 = smov 0  }
   0x4 LB: > { %s864_s16 = sadd.s32 4294967295, %s806_s15   ;;  %s598_s17 = sadd.s32 4294967294, %s806_s15   ;;  %s806_s15 = sphi %s849_s15, %s1094_s15   ;;  %s802_s14 = sphi %s847_s14, %s1093_s14   ;;  %s798_s13 = sphi %s845_s13, %s1092_s13   ;;  %s794_s12 = sphi %s843_s12, %s1091_s12  }
   0x5   : > { %s868_s18 = sadd.s32 1, %s806_s15   ;;  %s92_s19 = sadd.s32 1, %s802_s14 }
   0x6   : > { %s89_s20 = ssub.s32 %s806_s15, %s868_s18  ;;  %p102_p0 = scmp.ne.s32.totalorder %s802_s14, %s798_s13 }
   0x7   : > { %p90_p1 = scmp.eq.s32.totalorder %s89_s20, 0  ;;  %p103_p2 = scmp.eq.s32.totalorder %s864_s16, 1 }
   0x8   : > { %p108_p3 = scmp.ne.s32.totalorder %s798_s13, %s794_s12  ;;  %p109_p4 = scmp.eq.s32.totalorder %s598_s17, 1 }
   0x9   : > { %s879_s21 = scalar_select %p90_p1, %s802_s14, %s92_s19  }
   0xa   : > { %p881_p5 = por %p103_p2, %p102_p0  ;;  %p885_p6 = por %p109_p4, %p108_p3 }
   0xb   : > { %p599_p7 = scmp.ge.s32.totalorder %s806_s15, 1  ;;  %p116_p8 = scmp.lt.s32.totalorder %s806_s15, 3 }
   0xc   : > { %s1088_s23 = scalar_select %p885_p6, 1, 0 }
   0xd   : > { %p659_p9 = scmp.eq.s32.totalorder %s864_s16, 0  ;;  %p892_p10 = pnand %p599_p7, %p116_p8 }
   0xe   : > { %s808_s25 = smov [#allocation2]  }
   0xf   : > { %s128_s26 = sshll.u32 %s808_s25, 4  ;;  %p651_p11 = pneg %p892_p10  ;;  %s129_s26 = int_to_ptr.vmem [resolvable:$true] %s128_s26 }
  0x10   : > { %s727_s27 = scalar_lea.vmem %s129_s26, 256  ;;  %p735_p3 = scmp.lt.s32.totalorder %s129_s26, %s129_s26 }
  0x11   : > { %p652_p12 = pnand %p659_p9, %p651_p11  ;;  %p728_p0 = scmp.ne.s32.totalorder %s129_s26, %s727_s27 }
  0x12   : > { %p736_p4 = scmp.lt.s32.totalorder %s727_s27, %s727_s27 }
  0x13   : > { %p718_p13 = pneg %p652_p12 }
  0x14   : > { %p737_p6 = por %p736_p4, %p735_p3 }
  0x15   : > { %p730_p1 = pnand %p728_p0, %p718_p13 }
  0x17   : > { %p731_p2 = pneg %p730_p1 }
  0x19   : > { %p738_p7 = pnand %p737_p6, %p731_p2 }
  0x1b   : > { %741 = shalt.err (!%p738_p7)
}
  0x1c   : > { %s809_s28 = smov 64   ;;  %s810_s29 = smov 4  }
  0x1d   : > { %654 = dma.hbm_to_vmem [thread:$0]  (!%p652_p12), %s1084_s1, 256, %s129_s26, [#allocation3], %s809_s28, %s809_s28, %s810_s29  }
  0x1e   : > { %155 = sbr.rel (%p892_p10) target bundleno = 445 (0x1bd), region = 32 }
  0x23   : > { %785 = dma.done.wait (%p659_p9), [#allocation3], 256  }
  0x24   : > { %787 = vsyncadd (%p659_p9), [#allocation3], 4294967040  ;;  %p179_p8 = scmp.lt.s32.totalorder %s864_s16, 1  ;;  %s811_s10 = smov 90   ;;  %v818_v6 = vmov 0   ;;  %v945_v7 = vld [vmem:[#allocation2] sm:$0xff]  }
  0x25   : > { %s812_s11 = smov 92   ;;  %s813_s17 = smov 91   ;;  %428 = vmatprep.mubr.bf16.mxu0 %v818_v6  ;;  %708 = vset.pattern.permute.xlu0 %v818_v6  ;;  %vm380_vm0 = vcmask 588800   ;;  %v346_v8 = vld [vmem:[%s1085_s2] sm:$0xff]  ;;  %v347_v9 = vld [vmem:[%s1085_s2 + $0x8] sm:$0xff]  ;;  %v348_v10 = vld [vmem:[%s1085_s2 + $0x10] sm:$0xff] }
  0x26   : > { %s180_s5 = scalar_select %p179_p8, %s864_s16, 1  ;;  %638 = vmatprep.mubr.msk.bf16.mxu1 %vm380_vm0, %v945_v7  ;;  %709 = vset.pattern.permute.xlu1 %v818_v6  ;;  %v349_v11 = vld [vmem:[%s1085_s2 + $0x18] sm:$0xff]  ;;  %vm289_vm1 = vcmask 736256   ;;  %vm293_vm2 = vcmask 1043456   ;;  %vm265_vm3 = vcmask 752640   ;;  %vm277_vm4 = vcmask 744448  }
  0x27   : > { %s814_s19 = smov 109   ;;  %s815_s20 = smov 108   ;;  %vm241_vm5 = vcmask 891904   ;;  %vm253_vm6 = vcmask 883712   ;;  %vm217_vm7 = vcmask 1031168   ;;  %vm229_vm8 = vcmask 900096  }
  0x28   : > { %s620_s6 = sshll.u32 %s180_s5, 4  ;;  %s816_s24 = smov 126   ;;  %vm205_vm9 = vcmask 1039360  }
  0x29   : > { %s183_s9 = scalar_lea.vmem %s1083_s0, %s620_s6  ;;  %s817_s25 = smov 110  }
  0x2a   : > { %v186_v0 = vld [vmem:[%s183_s9 + $0x8] sm:$0xff]  ;;  %v185_v1 = vld [vmem:[%s183_s9] sm:$0xff]  ;;  %s819_s26 = smov 127   ;;  %s176_s8 = sand.u32 1, %s798_s13  }
  0x2b   : > { %v914_v2 = vcombine.low %v186_v0, %v186_v0  ;;  %v916_v3 = vcombine.low %v185_v1, %v185_v1  ;;  %v920_v4 = vcombine.high %v185_v1, %v185_v1  ;;  %v609_v5 = vcombine.high %v186_v0, %v186_v0  ;;  %s643_s9 = smul.u32 96, %s176_s8 }
  0x2d   : > { %285 = vrot.lane.b32.xlu1 %v914_v2, %s811_s10  ;;  %281 = vrot.lane.b32.xlu0 %v916_v3, %s811_s10 }
  0x31   : > { %259 = vrot.lane.b32.xlu1 %v920_v4, %s812_s11  ;;  %283 = vrot.lane.b32.xlu0 %v920_v4, %s811_s10 }
  0x35   : > { %271 = vrot.lane.b32.xlu1 %v920_v4, %s813_s17  ;;  %261 = vrot.lane.b32.xlu0 %v914_v2, %s812_s11 }
  0x39   : > { %257 = vrot.lane.b32.xlu1 %v916_v3, %s812_s11  ;;  %273 = vrot.lane.b32.xlu0 %v914_v2, %s813_s17 }
  0x3d   : > { %235 = vrot.lane.b32.xlu1 %v920_v4, %s814_s19  ;;  %269 = vrot.lane.b32.xlu0 %v916_v3, %s813_s17 }
  0x41   : > { %247 = vrot.lane.b32.xlu1 %v920_v4, %s815_s20  ;;  %237 = vrot.lane.b32.xlu0 %v914_v2, %s814_s19 }
  0x45   : > { %233 = vrot.lane.b32.xlu1 %v916_v3, %s814_s19  ;;  %249 = vrot.lane.b32.xlu0 %v914_v2, %s815_s20 }
  0x49   : > { %287 = vrot.lane.b32.xlu1 %v609_v5, %s811_s10  ;;  %245 = vrot.lane.b32.xlu0 %v916_v3, %s815_s20  ;;  %s1018_s10 = scalar_lea.vmem [#allocation5], %s643_s9 }
  0x4d   : > { %213 = vrot.lane.b32.xlu1 %v914_v2, %s816_s24  ;;  %211 = vrot.lane.b32.xlu0 %v920_v4, %s816_s24 }
  0x51   : > { %225 = vrot.lane.b32.xlu1 %v914_v2, %s817_s25  ;;  %223 = vrot.lane.b32.xlu0 %v920_v4, %s817_s25 }
  0x55   : > { %275 = vrot.lane.b32.xlu1 %v609_v5, %s813_s17  ;;  %263 = vrot.lane.b32.xlu0 %v609_v5, %s812_s11  ;;  %s644_s11 = smul.u32 1536, %s864_s16  ;;  %s524_s17 = sshll.u32 %s1018_s10, 4  ;;  %s1036_s17 = int_to_ptr.vmem [resolvable:$true] %s524_s17 }
  0x59   : > { %221 = vrot.lane.b32.xlu1 %v916_v3, %s817_s25  ;;  %209 = vrot.lane.b32.xlu0 %v916_v3, %s816_s24 }
  0x5d   : > { %201 = vrot.lane.b32.xlu1 %v914_v2, %s819_s26  ;;  %199 = vrot.lane.b32.xlu0 %v920_v4, %s819_s26 }
  0x61   : > { %251 = vrot.lane.b32.xlu1 %v609_v5, %s815_s20  ;;  %239 = vrot.lane.b32.xlu0 %v609_v5, %s814_s19  ;;  %s1034_s20 = scalar_lea.hbm %s1086_s3, %s644_s11 }
  0x65   : > { %215 = vrot.lane.b32.xlu1 %v609_v5, %s816_s24  ;;  %197 = vrot.lane.b32.xlu0 %v916_v3, %s819_s26  ;;  %s1043_s24 = scalar_lea.sflag [#allocation4], %s176_s8 }
  0x69   : > { %203 = vrot.lane.b32.xlu1 %v609_v5, %s819_s26  ;;  %227 = vrot.lane.b32.xlu0 %v609_v5, %s817_s25  ;;  %s742_s25 = scalar_lea.vmem %s1036_s17, 1536  ;;  %s820_s26 = smov [#allocation5]  }
  0x6a   : > { %p743_p6 = scmp.ne.s32.totalorder %s1036_s17, %s742_s25  ;;  %s746_s27 = sshll.u32 %s820_s26, 4  ;;  %s747_s27 = int_to_ptr.vmem [resolvable:$false] %s746_s27 }
  0x6b   : > { %s748_s28 = scalar_lea.vmem %s747_s27, 3072  ;;  %p749_p11 = scmp.lt.s32.totalorder %s1036_s17, %s747_s27 }
  0x6c   : > { %p744_p9 = pnand %p743_p6, %p881_p5  ;;  %p750_p12 = scmp.lt.s32.totalorder %s748_s28, %s742_s25 }
  0x6d   : > { %352 = vperm.xlu0 %708, %v346_v8   ;;  %357 = vperm.xlu1 %709, %v347_v9  }
  0x6e   : > { %p745_p10 = pneg %p744_p9  ;;  %p751_p13 = por %p750_p12, %p749_p11 }
  0x70   : > { %p752_p0 = pnand %p751_p13, %p745_p10 }
  0x71   : > { %362 = vperm.xlu1 %709, %v348_v10   ;;  %367 = vperm.xlu0 %708, %v349_v11  }
  0x9f   : > { %v286_v12 = vpop.permute.xlu1 %285  ;;  %v282_v13 = vpop.permute.xlu0 %281 }
  0xa3   : > { %v260_v14 = vpop.permute.xlu1 %259  ;;  %v284_v15 = vpop.permute.xlu0 %283 }
  0xa4   : > { %v291_v16 = vsel %vm289_vm1, %v284_v15, %v286_v12  ;;  %v290_v17 = vsel %vm289_vm1, %v282_v13, %v284_v15 }
  0xa5   : > { %612 = vmatprep.subr.msk.bf16.mxu0 %vm293_vm2, %v291_v16  ;;  %v388_v18 = vsel %vm293_vm2, %v290_v17, 0 }
  0xa6   : > { %403 = vmatpush1.bf16.msra.mxu0 %v388_v18 }
  0xa7   : > { %v272_v19 = vpop.permute.xlu1 %271  ;;  %v262_v20 = vpop.permute.xlu0 %261 }
  0xa8   : > { %v267_v23 = vsel %vm265_vm3, %v260_v14, %v262_v20 }
  0xab   : > { %v258_v21 = vpop.permute.xlu1 %257  ;;  %v274_v22 = vpop.permute.xlu0 %273 }
  0xac   : > { %v279_v24 = vsel %vm277_vm4, %v272_v19, %v274_v22  ;;  %v266_v28 = vsel %vm265_vm3, %v258_v21, %v260_v14  ;;  %v715_v21 = vld [vmem:[#allocation2 + $0x8] sm:$0xff]  }
  0xad   : > { %v336_v25 = vsel %vm293_vm2, %v267_v23, %v279_v24 }
  0xae   : > { %404 = vmatprep.subr.bf16.mxu0 %v336_v25 }
  0xaf   : > { %v236_v26 = vpop.permute.xlu1 %235  ;;  %v270_v27 = vpop.permute.xlu0 %269 }
  0xb0   : > { %v278_v29 = vsel %vm277_vm4, %v270_v27, %v272_v19 }
  0xb1   : > { %v332_v30 = vsel %vm293_vm2, %v266_v28, %v278_v29 }
  0xb2   : > { %405 = vmatpush1.bf16.msra.mxu0 %v332_v30 }
  0xb3   : > { %v248_v31 = vpop.permute.xlu1 %247  ;;  %v238_v32 = vpop.permute.xlu0 %237 }
  0xb4   : > { %v243_v35 = vsel %vm241_vm5, %v236_v26, %v238_v32 }
  0xb7   : > { %v234_v33 = vpop.permute.xlu1 %233  ;;  %v250_v34 = vpop.permute.xlu0 %249 }
  0xb8   : > { %v255_v36 = vsel %vm253_vm6, %v248_v31, %v250_v34  ;;  %v242_v40 = vsel %vm241_vm5, %v234_v33, %v236_v26 }
  0xb9   : > { %v324_v37 = vsel %vm293_vm2, %v243_v35, %v255_v36 }
  0xba   : > { %406 = vmatprep.subr.bf16.mxu0 %v324_v37 }
  0xbb   : > { %v288_v38 = vpop.permute.xlu1 %287  ;;  %v246_v39 = vpop.permute.xlu0 %245 }
  0xbc   : > { %v254_v41 = vsel %vm253_vm6, %v246_v39, %v248_v31  ;;  %v292_v42 = vsel %vm289_vm1, %v286_v12, %v288_v38 }
  0xbd   : > { %642 = vmatprep.subr.msk.bf16.mxu1 %vm293_vm2, %v292_v42  ;;  %v320_v43 = vsel %vm293_vm2, %v242_v40, %v254_v41  ;;  %v394_v44 = vsel %vm293_vm2, %v292_v42, 0 }
  0xbe   : > { %407 = vmatpush1.bf16.msra.mxu0 %v320_v43  ;;  %629 = vmatpush3.bf16.msra.mxu1 %v394_v44 }
  0xbf   : > { %v214_v45 = vpop.permute.xlu1 %213  ;;  %v212_v46 = vpop.permute.xlu0 %211 }
  0xc0   : > { %v219_v49 = vsel %vm217_vm7, %v212_v46, %v214_v45 }
  0xc3   : > { %v226_v47 = vpop.permute.xlu1 %225  ;;  %v224_v48 = vpop.permute.xlu0 %223 }
  0xc4   : > { %v231_v50 = vsel %vm229_vm8, %v224_v48, %v226_v47 }
  0xc5   : > { %v312_v51 = vsel %vm293_vm2, %v219_v49, %v231_v50 }
  0xc6   : > { %408 = vmatprep.subr.bf16.mxu0 %v312_v51 }
  0xc7   : > { %v276_v52 = vpop.permute.xlu1 %275  ;;  %v264_v53 = vpop.permute.xlu0 %263 }
  0xc8   : > { %v280_v54 = vsel %vm277_vm4, %v274_v22, %v276_v52  ;;  %v268_v55 = vsel %vm265_vm3, %v262_v20, %v264_v53 }
  0xc9   : > { %v340_v56 = vsel %vm293_vm2, %v268_v55, %v280_v54 }
  0xca   : > { %630 = vmatprep.subr.bf16.mxu1 %v340_v56 }
  0xcb   : > { %v222_v57 = vpop.permute.xlu1 %221  ;;  %631 = vmatpush3.bf16.msra.mxu1 %v340_v56  ;;  %v210_v58 = vpop.permute.xlu0 %209 }
  0xcc   : > { %v230_v59 = vsel %vm229_vm8, %v222_v57, %v224_v48  ;;  %v218_v60 = vsel %vm217_vm7, %v210_v58, %v212_v46 }
  0xcd   : > { %v308_v61 = vsel %vm293_vm2, %v218_v60, %v230_v59 }
  0xce   : > { %409 = vmatpush1.bf16.msra.mxu0 %v308_v61 }
  0xcf   : > { %v202_v62 = vpop.permute.xlu1 %201  ;;  %v200_v63 = vpop.permute.xlu0 %199 }
  0xd0   : > { %v207_v0 = vsel %vm205_vm9, %v200_v63, %v202_v62 }
  0xd1   : > { %v300_v1 = vsel %vm293_vm2, %v920_v4, %v207_v0 }
  0xd2   : > { %410 = vmatprep.subr.bf16.mxu0 %v300_v1 }
  0xd3   : > { %v252_v5 = vpop.permute.xlu1 %251  ;;  %v240_v8 = vpop.permute.xlu0 %239 }
  0xd4   : > { %v256_v9 = vsel %vm253_vm6, %v250_v34, %v252_v5  ;;  %v244_v10 = vsel %vm241_vm5, %v238_v32, %v240_v8 }
  0xd5   : > { %v328_v11 = vsel %vm293_vm2, %v244_v10, %v256_v9 }
  0xd6   : > { %632 = vmatprep.subr.bf16.mxu1 %v328_v11 }
  0xd7   : > { %v216_v12 = vpop.permute.xlu1 %215  ;;  %633 = vmatpush3.bf16.msra.mxu1 %v328_v11  ;;  %v198_v13 = vpop.permute.xlu0 %197 }
  0xd8   : > { %v206_v14 = vsel %vm205_vm9, %v198_v13, %v200_v63  ;;  %v220_v17 = vsel %vm217_vm7, %v214_v45, %v216_v12 }
  0xd9   : > { %v296_v15 = vsel %vm293_vm2, %v916_v3, %v206_v14 }
  0xda   : > { %411 = vmatpush1.bf16.msra.mxu0 %v296_v15 }
  0xdb   : > { %v204_v4 = vpop.permute.xlu1 %203  ;;  %v228_v16 = vpop.permute.xlu0 %227 }
  0xdc   : > { %v208_v18 = vsel %vm205_vm9, %v202_v62, %v204_v4  ;;  %v232_v19 = vsel %vm229_vm8, %v226_v47, %v228_v16 }
  0xdd   : > { %613 = vmatmul.mubr.msk.bf16.vlgmr.msra.gmra.mxu0 %vm380_vm0, %v945_v7  ;;  %v316_v20 = vsel %vm293_vm2, %v220_v17, %v232_v19  ;;  %v304_v3 = vsel %vm293_vm2, %v914_v2, %v208_v18 }
  0xde   : > { %634 = vmatprep.subr.bf16.mxu1 %v316_v20  ;;  %438 = vmatprep.mubr.bf16.mxu0 %v818_v6 }
  0xdf   : > { %635 = vmatpush3.bf16.msra.mxu1 %v316_v20 }
  0xe0   : > { %636 = vmatprep.subr.bf16.mxu1 %v304_v3 }
  0xe3   : > { %637 = vmatpush3.bf16.msra.mxu1 %v304_v3 }
  0xe5   : > { %614 = vmatmul.mubr.msk.bf16.gmra.mxu0 %vm380_vm0, %v715_v21 }
  0xe6   : > { %639 = vmatmul.mubr.msk.bf16.vlgmr.msra.gmra.mxu1 %vm380_vm0, %v715_v21 }
  0xe8   : > { %v353_v7 = vpop.permute.xlu0 %352  ;;  %v358_v23 = vpop.permute.xlu1 %357 }
  0xec   : > { %v363_v28 = vpop.permute.xlu1 %362  ;;  %v368_v35 = vpop.permute.xlu0 %367 }
 0x19d   : > { %v430_v22 = vpop.f32.mrf.mxu0 }
 0x19e   : > { %v431_v24 = vadd.f32 %v430_v22, %v353_v7 }
 0x19f   : > { %v432_v25 = vpop.f32.mrf.mxu0 }
 0x1a0   : > { %498 = vst [vmem:[%s1018_s10] sm:$0xff] %v431_v24  ;;  %v433_v2 = vadd.f32 %v432_v25, %v353_v7 }
 0x1a1   : > { %v434_v6 = vpop.f32.mrf.mxu0 }
 0x1a2   : > { %499 = vst [vmem:[%s1018_s10 + $0x8] sm:$0xff] %v433_v2  ;;  %v435_v26 = vadd.f32 %v434_v6, %v358_v23 }
 0x1a3   : > { %v436_v27 = vpop.f32.mrf.mxu0 }
 0x1a4   : > { %501 = vst [vmem:[%s1018_s10 + $0x18] sm:$0xff] %v435_v26  ;;  %v437_v29 = vadd.f32 %v436_v27, %v358_v23 }
 0x1a5   : > { %v440_v30 = vpop.f32.mrf.mxu0 }
 0x1a6   : > { %502 = vst [vmem:[%s1018_s10 + $0x20] sm:$0xff] %v437_v29  ;;  %v441_v31 = vadd.f32 %v440_v30, %v363_v28  ;;  %v640_v32 = vpop.f32.mrf.mxu1 }
 0x1a7   : > { %v492_v33 = vadd.f32 %v640_v32, %v363_v28  ;;  %v442_v34 = vpop.f32.mrf.mxu0 }
 0x1a8   : > { %504 = vst [vmem:[%s1018_s10 + $0x30] sm:$0xff] %v441_v31  ;;  %v443_v36 = vadd.f32 %v442_v34, %v363_v28  ;;  %v483_v37 = vpop.f32.mrf.mxu1 }
 0x1a9   : > { %506 = vst [vmem:[%s1018_s10 + $0x40] sm:$0xff] %v492_v33  ;;  %v484_v38 = vadd.f32 %v483_v37, %v353_v7  ;;  %v444_v39 = vpop.f32.mrf.mxu0 }
 0x1aa   : > { %505 = vst [vmem:[%s1018_s10 + $0x38] sm:$0xff] %v443_v36  ;;  %v445_v40 = vadd.f32 %v444_v39, %v368_v35  ;;  %v641_v41 = vpop.f32.mrf.mxu1 }
 0x1ab   : > { %500 = vst [vmem:[%s1018_s10 + $0x10] sm:$0xff] %v484_v38  ;;  %v495_v42 = vadd.f32 %v641_v41, %v368_v35  ;;  %v446_v43 = vpop.f32.mrf.mxu0 }
 0x1ac   : > { %507 = vst [vmem:[%s1018_s10 + $0x48] sm:$0xff] %v445_v40  ;;  %v447_v44 = vadd.f32 %v446_v43, %v368_v35  ;;  %v486_v45 = vpop.f32.mrf.mxu1 }
 0x1ad   : > { %509 = vst [vmem:[%s1018_s10 + $0x58] sm:$0xff] %v495_v42  ;;  %v487_v46 = vadd.f32 %v486_v45, %v358_v23 }
 0x1ae   : > { %508 = vst [vmem:[%s1018_s10 + $0x50] sm:$0xff] %v447_v44 }
 0x1af   : > { %503 = vst [vmem:[%s1018_s10 + $0x28] sm:$0xff] %v487_v46 }
 0x1b0   : > { %755 = shalt.err (!%p752_p0)
}
 0x1b1   : > { %s756_s29 = scalar_lea.hbm %s1034_s20, 1536  ;;  %s760_s5 = scalar_lea.hbm %s1086_s3, 3072 }
 0x1b2   : > { %p757_p1 = scmp.ne.s32.totalorder %s1034_s20, %s756_s29  ;;  %p761_p4 = scmp.lt.s32.totalorder %s1034_s20, %s1086_s3 }
 0x1b3   : > { %p762_p7 = scmp.lt.s32.totalorder %s760_s5, %s756_s29 }
 0x1b4   : > { %p758_p2 = pnand %p757_p1, %p881_p5 }
 0x1b5   : > { %p763_p8 = por %p762_p7, %p761_p4 }
 0x1b6   : > { %p759_p3 = pneg %p758_p2 }
 0x1b8   : > { %p764_p6 = pnand %p763_p8, %p759_p3 }
 0x1ba   : > { %767 = shalt.err (!%p764_p6)
}
 0x1bb   : > { %s821_s8 = smov 384   ;;  %s822_s9 = smov 24  }
 0x1bc   : > { %649 = dma.vmem_to_hbm [thread:$0]  (%p881_p5), %s1036_s17, 1536, %s1034_s20, %s1043_s24, %s821_s8, %s821_s8, %s822_s9  }
 0x1bd PF: > { %p661_p9 = scmp.ge.s32.totalorder %s806_s15, 2  ;;  %s539_s10 = sand.u32 1, %s794_s12  }
 0x1be   : > { %p1090_p10 = scmp.ne.s32.totalorder %s1088_s23, 0  ;;  %s540_s11 = scalar_lea.sflag [#allocation4], %s539_s10 }
 0x1c0   : > { %p656_p11 = pnand %p661_p9, %p1090_p10 }
 0x1c2   : > { %p657_p12 = pneg %p656_p11 }
 0x1c4   : > { %789 = dma.done.wait (%p657_p12), %s540_s11, 1536  }
 0x1c5   : > { %791 = vsyncadd (%p657_p12), %s540_s11, 4294965760  ;;  %p14_p13 = scmp.ge.s32.totalorder %s868_s18, 4   ;;  %s1091_s12 = smov %s798_s13 }
 0x1c6   : > { %s1092_s13 = smov %s802_s14  ;;  %s1093_s14 = smov %s879_s21 }
 0x1c7   : > { %s1094_s15 = smov %s868_s18  ;;  %16 = sbr.rel (!%p14_p13) target bundleno = 4 (0x4), region = 72 }
 0x1cc   :  { %545 = vsyncpa [#allocation3], 1 }
 0x1cd   :  { %547 = vsyncpa [#allocation3 + $0x1], 1 }
 0x1ce   :  { %548 = vsyncpa [#allocation4], 1 }
 0x1cf   :  { %550 = vsyncpa [#allocation4 + $0x1], 1 }

</bundles_post_ra>
